<compile_context>
chip_gen: v5e
topology: v5e:2x2
jax: 0.10.0
libtpu: 0.0.40
codegen_flags: <defaults>
</compile_context>

<pallas_src>
from functools import partial

import jax
import jax.numpy as jnp
import numpy as np
from jax.experimental import pallas as pl
from jax.experimental.pallas import tpu as pltpu

_OUT_LANES = 8  # packed output: lane 0 = logp(action), 1 = value, 2 = entropy, rest = 0


# ----------------------------------- kernel -----------------------------------

def _hyper_ac_eval_kernel(meta_ref, slab_ref, w1_ref, w2_ref, e_ref, out_ref,
                          *, state_dim, action_dim):
  """One batch tile: fused actor+critic hypernetworks + Categorical statistics."""
  f32 = jnp.float32
  S, A = state_dim, action_dim
  SA = S * A

  # stage 1: fused hidden layer; b1 folded into the matmul via meta's ones lane.
  # w1's last column is [0,...,0,1], so h's last column is exactly 1.0 (relu(1)=1):
  # it later drives the folded b2 row of w2.
  h = jnp.maximum(jnp.dot(meta_ref[...], w1_ref[...],
                          preferred_element_type=f32), 0.0)            # [TB, 2H+1]

  # stage 2: block-diagonal second layer -> all generated params in one slab.
  # columns (s-major): [actor W (S*A) | actor b (A) | critic W (S) | critic b (1)]
  packed = jnp.dot(h.astype(w2_ref.dtype), w2_ref[...],
                   preferred_element_type=f32)                          # [TB, T]

  # dynamic per-sample layers: multiplier [state_rep | 1s | state | 1] built ON THE MXU
  # from [state | 1] and the constant 0/1 expansion matrix E (no [B,T] host slab).
  state1 = slab_ref[:, :S + 1]                                          # [TB, S+1]
  mult = jnp.dot(state1, e_ref[...], preferred_element_type=f32)        # [TB, T]
  prod = packed * mult

  # actor: log2(S) contiguous-slice halving tree over the s-major columns, + actor bias
  acc = prod[:, :SA]
  if (S & (S - 1)) == 0:
    n = S
    while n > 1:
      half = n // 2
      acc = acc[:, :half * A] + acc[:, half * A:]
      n = half
    logits = acc + prod[:, SA:SA + A]
  else:
    # fallback for non-power-of-two state_dim
    logits = prod[:, SA:SA + A]
    for s in range(S):
      logits = logits + prod[:, s * A:(s + 1) * A]

  # critic: value = sum_s state*w_c + b_c (bias column already multiplied by 1)
  value = jnp.sum(prod[:, SA + A:], axis=1, keepdims=True)              # [TB, 1]

  # ---- Categorical(logits): log_prob(action) and entropy (all f32) ----
  m = jnp.max(logits, axis=1, keepdims=True)
  exps = jnp.exp(logits - m)
  sum_exp = jnp.sum(exps, axis=1, keepdims=True)
  lse = m + jnp.log(sum_exp)
  logprobs = logits - lse
  probs = exps * pl.reciprocal(sum_exp, approx=False)   # recip + mul instead of per-lane divide
  entropy = -jnp.sum(probs * logprobs, axis=1, keepdims=True)

  # action index travels as the last lane of the state slab (exact small integer)
  act_idx = slab_ref[:, S + 1:S + 2].astype(f32).astype(jnp.int32)      # [TB, 1]
  aidx = jax.lax.broadcasted_iota(jnp.int32, logits.shape, 1)
  logp_act = jnp.sum(jnp.where(aidx == act_idx, logprobs, 0.0),
                     axis=1, keepdims=True)

  # packed 8-lane output (lane 0/1/2 = logp/value/entropy)
  lane = jax.lax.broadcasted_iota(jnp.int32, out_ref.shape, 1)
  out_ref[...] = jnp.where(lane == 0, logp_act,
                 jnp.where(lane == 1, value,
                 jnp.where(lane == 2, entropy, 0.0)))


# ------------------------------ host-side fusion ------------------------------

def prepare_hyper_ac_params(actor_params, critic_params, *, mxu_dtype=jnp.float32):
  """Fuse the six hypernet matrices + constant expansion matrix.

  Call ONCE per parameter set (hoisted out of evaluate())."""
  f32 = jnp.float32
  M, H = actor_params["w1"].shape
  A = actor_params["wb"].shape[1]
  S = actor_params["ww"].shape[1] // A
  SA = S * A
  T = SA + A + S + 1

  # first layer: [actor w1 | critic w1 | ones-col], b1 folded as an extra input row
  w1_top = jnp.concatenate([actor_params["w1"], critic_params["w1"],
                            jnp.zeros((M, 1), f32)], axis=1)            # [M, 2H+1]
  w1_bias = jnp.concatenate([actor_params["b1"], critic_params["b1"],
                             jnp.ones((1, 1), f32)], axis=1)            # [1, 2H+1]
  w1p = jnp.concatenate([w1_top, w1_bias], axis=0)                      # [M+1, 2H+1]

  # second layer: block-diagonal [actor | critic], b2 folded as an extra row driven by
  # the guaranteed-1.0 last column of h.
  w2_a = jnp.concatenate([actor_params["ww"], actor_params["wb"],
                          jnp.zeros((H, S + 1), f32)], axis=1)          # [H, T]
  w2_c = jnp.concatenate([jnp.zeros((H, SA + A), f32),
                          critic_params["ww"], critic_params["wb"]], axis=1)
  w2_bias = jnp.concatenate([actor_params["bw"], actor_params["bb"],
                             critic_params["bw"], critic_params["bb"]], axis=1)
  w2p = jnp.concatenate([w2_a, w2_c, w2_bias], axis=0)                  # [2H+1, T]

  # constant 0/1 expansion matrix: [state | 1] (S+1) -> multiplier over the T packed cols
  e = np.zeros((S + 1, T), np.float32)
  for s in range(S):
    e[s, s * A:(s + 1) * A] = 1.0     # actor W columns (s-major) get state[s]
    e[s, SA + A + s] = 1.0            # critic W column gets state[s]
  e[S, SA:SA + A] = 1.0               # actor bias columns get 1
  e[S, T - 1] = 1.0                   # critic bias column gets 1

  return {
      "w1": w1p.astype(mxu_dtype),
      "w2": w2p.astype(mxu_dtype),
      "e": jnp.asarray(e, mxu_dtype),
      "dims": (M, S, A, H, T),
      "mxu_dtype": jnp.dtype(mxu_dtype),
  }


def _choose_batch_tile(B, batch_tile):
  cap = max(8, min(int(batch_tile), 2048))
  cap = min(cap, ((B + 7) // 8) * 8)             # never exceed the (8-padded) batch
  if B >= 16:
    cap = min(cap, max(8, (B // 2) // 8 * 8))    # >= 2 grid steps: v7x dual-TC sharding
  for tb in (2048, 1024, 512, 256, 128, 64, 32, 16, 8):
    if tb <= cap:
      return tb
  return 8


def hyper_ac_evaluate(meta_v, state, action, fused, *, batch_tile=1024):
  """Pallas evaluation: returns (action_logprobs [B], state_values [B,1], entropy [B])."""
  f32 = jnp.float32
  M, S, A, H, T = fused["dims"]
  mxu_dtype = fused["mxu_dtype"]
  B = meta_v.shape[0]
  if mxu_dtype == jnp.dtype(jnp.bfloat16):
    # action index rides in the bf16 slab; must stay exactly representable
    assert A <= 256, "bf16 fast path requires action_dim <= 256"

  TB = _choose_batch_tile(B, batch_tile)
  n_blk = -(-B // TB)
  B_pad = n_blk * TB

  # per-row input slabs (bf16 on the fast path): [meta | 1] and [state | 1 | action]
  ones = jnp.ones((B, 1), f32)
  meta1 = jnp.concatenate([meta_v.astype(f32), ones], axis=1).astype(mxu_dtype)
  slab = jnp.concatenate([state.astype(f32), ones,
                          action.reshape(B, 1).astype(f32)], axis=1).astype(mxu_dtype)
  if B_pad != B:
    pad = B_pad - B
    meta1 = jnp.pad(meta1, ((0, pad), (0, 0)))
    slab = jnp.pad(slab, ((0, pad), (0, 0)))

  kernel = partial(_hyper_ac_eval_kernel, state_dim=S, action_dim=A)

  def row_spec(feat):
    return pl.BlockSpec((TB, feat), lambda i: (i, 0))

  def const_spec(shp):
    return pl.BlockSpec(shp, lambda i: (0, 0))

  itemsize = jnp.dtype(mxu_dtype).itemsize
  cost = pl.CostEstimate(
      flops=int(2 * B_pad * ((M + 1) * (2 * H + 1) + (2 * H + 1) * T + (S + 1) * T)
                + 10 * B_pad * T),
      transcendentals=int(B_pad * (A + 2)),
      bytes_accessed=int(itemsize * (B_pad * (M + S + 3) + (M + 1) * (2 * H + 1)
                                     + (2 * H + 1) * T + (S + 1) * T)
                         + 4 * B_pad * _OUT_LANES),
  )

  out = pl.pallas_call(
      kernel,
      grid=(n_blk,),
      out_shape=jax.ShapeDtypeStruct((B_pad, _OUT_LANES), f32),
      in_specs=[
          row_spec(M + 1),                      # [meta | 1]          per-row stream
          row_spec(S + 2),                      # [state | 1 | act]   per-row stream
          const_spec(fused["w1"].shape),        # fused first-layer weight  (VMEM-resident)
          const_spec(fused["w2"].shape),        # fused block-diag second-layer weight
          const_spec(fused["e"].shape),         # 0/1 expansion matrix (state -> multiplier)
      ],
      out_specs=row_spec(_OUT_LANES),
      compiler_params=pltpu.CompilerParams(
          dimension_semantics=("parallel",),    # megacore-shard batch tiles on v7x
          vmem_limit_bytes=16 * 1024 * 1024),
      cost_estimate=cost,
  )(meta1, slab, fused["w1"], fused["w2"], fused["e"])

  logp = out[:B, 0]
  value = out[:B, 1:2]
  ent = out[:B, 2]
  return logp, value, ent


# ----------------------------- params / reference ------------------------------

def _init_linear(key, fan_in, fan_out):
  # PyTorch nn.Linear default init: U(-1/sqrt(fan_in), 1/sqrt(fan_in)); stored [in, out].
  kw, kb = jax.random.split(key)
  bound = 1.0 / np.sqrt(fan_in)
  w = jax.random.uniform(kw, (fan_in, fan_out), jnp.float32, -bound, bound)
  b = jax.random.uniform(kb, (1, fan_out), jnp.float32, -bound, bound)
  return w, b


def init_hypernet_params(key, meta_v_dim, state_dim, out_dim, hidden_dim):
  k1, k2, k3 = jax.random.split(key, 3)
  w1, b1 = _init_linear(k1, meta_v_dim, hidden_dim)
  ww, bw = _init_linear(k2, hidden_dim, state_dim * out_dim)
  wb, bb = _init_linear(k3, hidden_dim, out_dim)
  return {"w1": w1, "b1": b1, "ww": ww, "bw": bw, "wb": wb, "bb": bb}


def _ref_hypernet(p, meta_v, state, out_dim):
  h = jnp.maximum(meta_v @ p["w1"] + p["b1"], 0.0)
  w = (h @ p["ww"] + p["bw"]).reshape(meta_v.shape[0], state.shape[1], out_dim)
  b = (h @ p["wb"] + p["bb"])
  return jnp.einsum("bs,bso->bo", state, w) + b


def _ref_evaluate(meta_v, state, action, ap, cp, action_dim):
  logits = _ref_hypernet(ap, meta_v, state, action_dim)
  value = _ref_hypernet(cp, meta_v, state, 1)
  logprobs = jax.nn.log_softmax(logits, axis=1)
  logp_act = jnp.take_along_axis(logprobs, action[:, None].astype(jnp.int32), axis=1)[:, 0]
  ent = -jnp.sum(jnp.exp(logprobs) * logprobs, axis=1)
  return logp_act, value, ent


if __name__ == "__main__":
  META, STATE, ACT, HID = 8, 16, 4, 32

  key = jax.random.PRNGKey(0)
  k_actor, k_critic, k_data = jax.random.split(key, 3)

  actor_params = init_hypernet_params(k_actor, META, STATE, ACT, HID)
  critic_params = init_hypernet_params(k_critic, META, STATE, 1, HID)

  # weight fusion is hoisted: done once per parameter set, reused across evaluate() calls
  fused_f32 = prepare_hyper_ac_params(actor_params, critic_params, mxu_dtype=jnp.float32)
  fused_bf16 = prepare_hyper_ac_params(actor_params, critic_params, mxu_dtype=jnp.bfloat16)

  def make_batch(k, B):
    k1, k2, k3 = jax.random.split(k, 3)
    meta_v = jax.random.normal(k1, (B, META), jnp.float32)
    state = jax.random.normal(k2, (B, STATE), jnp.float32)
    action = jax.random.randint(k3, (B,), 0, ACT, jnp.int32)
    return meta_v, state, action

  # 1) tiny batch (single grid step), exact f32 MXU path
  meta_v, state, action = make_batch(jax.random.fold_in(k_data, 0), 8)
  ref = _ref_evaluate(meta_v, state, action, actor_params, critic_params, ACT)
  got = hyper_ac_evaluate(meta_v, state, action, fused_f32)
  jax.block_until_ready(got)
  for g, r in zip(got, ref):
    assert np.allclose(np.asarray(g), np.asarray(r), atol=1e-5, rtol=1e-5)

  # 2) ragged batch: exercises host padding, multi-step "parallel" grid (dual-TC on v7x)
  meta_v, state, action = make_batch(jax.random.fold_in(k_data, 1), 100)
  ref = _ref_evaluate(meta_v, state, action, actor_params, critic_params, ACT)
  got = hyper_ac_evaluate(meta_v, state, action, fused_f32)
  jax.block_until_ready(got)
  for g, r in zip(got, ref):
    assert np.allclose(np.asarray(g), np.asarray(r), atol=1e-5, rtol=1e-5)

  # 3) bf16 MXU-operand + bf16 row-stream fast path (looser tolerance for the casts)
  meta_v, state, action = make_batch(jax.random.fold_in(k_data, 0), 8)
  ref = _ref_evaluate(meta_v, state, action, actor_params, critic_params, ACT)
  got = hyper_ac_evaluate(meta_v, state, action, fused_bf16)
  jax.block_until_ready(got)
  for g, r in zip(got, ref):
    assert np.allclose(np.asarray(g), np.asarray(r), atol=0.1, rtol=0.1)

  # TODO(synk): act()'s Categorical.sample() (stochastic action draw) is not kernelized;
  # only the deterministic evaluate() forward path is implemented here.
  print("KERNEL_OK")
</pallas_src>

<mosaic_0001>
module attributes {stable_mosaic.version = 11 : i64} {
  func.func @_hyper_ac_eval_kernel(%arg0: i32, %arg1: memref<8x9xf32, #tpu.memory_space<vmem>>, %arg2: memref<8x18xf32, #tpu.memory_space<vmem>>, %arg3: memref<9x65xf32, #tpu.memory_space<vmem>>, %arg4: memref<65x85xf32, #tpu.memory_space<vmem>>, %arg5: memref<17x85xf32, #tpu.memory_space<vmem>>, %arg6: memref<8x8xf32, #tpu.memory_space<vmem>>) attributes {dimension_semantics = [#tpu.dimension_semantics<parallel>], iteration_bounds = array<i64: 1>, scalar_prefetch = 0 : i64, scratch_operands = 0 : i64, tpu.core_type = #tpu.core_type<tc>, window_params = [{transform_indices = @transform_0, window_bounds = array<i64: 8, 9>}, {transform_indices = @transform_1, window_bounds = array<i64: 8, 18>}, {pipeline_mode = #tpu.pipeline_mode<synchronous>, transform_indices = @transform_2, window_bounds = array<i64: 9, 65>}, {pipeline_mode = #tpu.pipeline_mode<synchronous>, transform_indices = @transform_3, window_bounds = array<i64: 65, 85>}, {pipeline_mode = #tpu.pipeline_mode<synchronous>, transform_indices = @transform_4, window_bounds = array<i64: 17, 85>}, {transform_indices = @transform_5, window_bounds = array<i64: 8, 8>}]} {
    %c0 = arith.constant 0 : index
    %c0_0 = arith.constant 0 : index
    %0 = vector.load %arg1[%c0, %c0_0] : memref<8x9xf32, #tpu.memory_space<vmem>>, vector<8x9xf32>
    %c0_1 = arith.constant 0 : index
    %c0_2 = arith.constant 0 : index
    %1 = vector.load %arg3[%c0_1, %c0_2] : memref<9x65xf32, #tpu.memory_space<vmem>>, vector<9x65xf32>
    %cst = arith.constant dense<0.000000e+00> : vector<8x65xf32>
    %2 = tpu.matmul %0, %1, %cst {dimension_numbers = #tpu.dot_dimension_numbers<[1], [0], [0], [1], [0, 0, 1, 1], [], []>} : vector<8x9xf32>, vector<9x65xf32>, vector<8x65xf32> -> vector<8x65xf32>
    %cst_3 = arith.constant 0.000000e+00 : f32
    %3 = vector.broadcast %cst_3 : f32 to vector<8x65xf32>
    %4 = arith.maximumf %2, %3 : vector<8x65xf32>
    %c0_4 = arith.constant 0 : index
    %c0_5 = arith.constant 0 : index
    %5 = vector.load %arg4[%c0_4, %c0_5] : memref<65x85xf32, #tpu.memory_space<vmem>>, vector<65x85xf32>
    %cst_6 = arith.constant dense<0.000000e+00> : vector<8x85xf32>
    %6 = tpu.matmul %4, %5, %cst_6 {dimension_numbers = #tpu.dot_dimension_numbers<[1], [0], [0], [1], [0, 0, 1, 1], [], []>} : vector<8x65xf32>, vector<65x85xf32>, vector<8x85xf32> -> vector<8x85xf32>
    %c0_7 = arith.constant 0 : index
    %c0_8 = arith.constant 0 : index
    %7 = vector.load %arg2[%c0_7, %c0_8] : memref<8x18xf32, #tpu.memory_space<vmem>>, vector<8x17xf32>
    %c0_9 = arith.constant 0 : index
    %c0_10 = arith.constant 0 : index
    %8 = vector.load %arg5[%c0_9, %c0_10] : memref<17x85xf32, #tpu.memory_space<vmem>>, vector<17x85xf32>
    %cst_11 = arith.constant dense<0.000000e+00> : vector<8x85xf32>
    %9 = tpu.matmul %7, %8, %cst_11 {dimension_numbers = #tpu.dot_dimension_numbers<[1], [0], [0], [1], [0, 0, 1, 1], [], []>} : vector<8x17xf32>, vector<17x85xf32>, vector<8x85xf32> -> vector<8x85xf32>
    %10 = arith.mulf %6, %9 : vector<8x85xf32>
    %11 = vector.extract_strided_slice %10 {offsets = [0, 0], sizes = [8, 64], strides = [1, 1]} : vector<8x85xf32> to vector<8x64xf32>
    %12 = vector.extract_strided_slice %11 {offsets = [0, 0], sizes = [8, 32], strides = [1, 1]} : vector<8x64xf32> to vector<8x32xf32>
    %13 = vector.extract_strided_slice %11 {offsets = [0, 32], sizes = [8, 32], strides = [1, 1]} : vector<8x64xf32> to vector<8x32xf32>
    %14 = arith.addf %12, %13 : vector<8x32xf32>
    %15 = vector.extract_strided_slice %14 {offsets = [0, 0], sizes = [8, 16], strides = [1, 1]} : vector<8x32xf32> to vector<8x16xf32>
    %16 = vector.extract_strided_slice %14 {offsets = [0, 16], sizes = [8, 16], strides = [1, 1]} : vector<8x32xf32> to vector<8x16xf32>
    %17 = arith.addf %15, %16 : vector<8x16xf32>
    %18 = vector.extract_strided_slice %17 {offsets = [0, 0], sizes = [8, 8], strides = [1, 1]} : vector<8x16xf32> to vector<8x8xf32>
    %19 = vector.extract_strided_slice %17 {offsets = [0, 8], sizes = [8, 8], strides = [1, 1]} : vector<8x16xf32> to vector<8x8xf32>
    %20 = arith.addf %18, %19 : vector<8x8xf32>
    %21 = vector.extract_strided_slice %20 {offsets = [0, 0], sizes = [8, 4], strides = [1, 1]} : vector<8x8xf32> to vector<8x4xf32>
    %22 = vector.extract_strided_slice %20 {offsets = [0, 4], sizes = [8, 4], strides = [1, 1]} : vector<8x8xf32> to vector<8x4xf32>
    %23 = arith.addf %21, %22 : vector<8x4xf32>
    %24 = vector.extract_strided_slice %10 {offsets = [0, 64], sizes = [8, 4], strides = [1, 1]} : vector<8x85xf32> to vector<8x4xf32>
    %25 = arith.addf %23, %24 : vector<8x4xf32>
    %26 = vector.extract_strided_slice %10 {offsets = [0, 68], sizes = [8, 17], strides = [1, 1]} : vector<8x85xf32> to vector<8x17xf32>
    %cst_12 = arith.constant dense<0.000000e+00> : vector<8xf32>
    %27 = vector.multi_reduction <add>, %26, %cst_12 [1] : vector<8x17xf32> to vector<8xf32>
    %28 = vector.shape_cast %27 : vector<8xf32> to vector<8x1xf32>
    %cst_13 = arith.constant dense<0xFF800000> : vector<8xf32>
    %29 = vector.multi_reduction <maximumf>, %25, %cst_13 [1] : vector<8x4xf32> to vector<8xf32>
    %30 = vector.shape_cast %29 : vector<8xf32> to vector<8x1xf32>
    %31 = vector.broadcast %30 : vector<8x1xf32> to vector<8x4xf32>
    %32 = arith.subf %25, %31 : vector<8x4xf32>
    %33 = math.exp %32 : vector<8x4xf32>
    %cst_14 = arith.constant dense<0.000000e+00> : vector<8xf32>
    %34 = vector.multi_reduction <add>, %33, %cst_14 [1] : vector<8x4xf32> to vector<8xf32>
    %35 = vector.shape_cast %34 : vector<8xf32> to vector<8x1xf32>
    %36 = math.log %35 : vector<8x1xf32>
    %37 = arith.addf %30, %36 : vector<8x1xf32>
    %38 = vector.broadcast %37 : vector<8x1xf32> to vector<8x4xf32>
    %39 = arith.subf %25, %38 : vector<8x4xf32>
    %40 = tpu.reciprocal %35 : vector<8x1xf32> -> vector<8x1xf32>
    %41 = vector.broadcast %40 : vector<8x1xf32> to vector<8x4xf32>
    %42 = arith.mulf %33, %41 : vector<8x4xf32>
    %43 = arith.mulf %42, %39 : vector<8x4xf32>
    %cst_15 = arith.constant dense<0.000000e+00> : vector<8xf32>
    %44 = vector.multi_reduction <add>, %43, %cst_15 [1] : vector<8x4xf32> to vector<8xf32>
    %45 = vector.shape_cast %44 : vector<8xf32> to vector<8x1xf32>
    %cst_16 = arith.constant 0.000000e+00 : f32
    %46 = vector.broadcast %cst_16 : f32 to vector<8x1xf32>
    %47 = arith.subf %46, %45 : vector<8x1xf32>
    %c0_17 = arith.constant 0 : index
    %c17 = arith.constant 17 : index
    %48 = vector.load %arg2[%c0_17, %c17] : memref<8x18xf32, #tpu.memory_space<vmem>>, vector<8x1xf32>
    %49 = arith.fptosi %48 : vector<8x1xf32> to vector<8x1xi32>
    %50 = tpu.iota {dimensions = array<i32: 1>} : vector<8x4xi32>
    %51 = vector.broadcast %49 : vector<8x1xi32> to vector<8x4xi32>
    %52 = arith.cmpi eq, %50, %51 : vector<8x4xi32>
    %cst_18 = arith.constant 0.000000e+00 : f32
    %53 = vector.broadcast %cst_18 : f32 to vector<8x4xf32>
    %54 = arith.select %52, %39, %53 : vector<8x4xi1>, vector<8x4xf32>
    %cst_19 = arith.constant dense<0.000000e+00> : vector<8xf32>
    %55 = vector.multi_reduction <add>, %54, %cst_19 [1] : vector<8x4xf32> to vector<8xf32>
    %56 = vector.shape_cast %55 : vector<8xf32> to vector<8x1xf32>
    %57 = tpu.iota {dimensions = array<i32: 1>} : vector<8x8xi32>
    %c0_i32 = arith.constant 0 : i32
    %58 = vector.broadcast %c0_i32 : i32 to vector<8x8xi32>
    %59 = arith.cmpi eq, %57, %58 : vector<8x8xi32>
    %c1_i32 = arith.constant 1 : i32
    %60 = vector.broadcast %c1_i32 : i32 to vector<8x8xi32>
    %61 = arith.cmpi eq, %57, %60 : vector<8x8xi32>
    %c2_i32 = arith.constant 2 : i32
    %62 = vector.broadcast %c2_i32 : i32 to vector<8x8xi32>
    %63 = arith.cmpi eq, %57, %62 : vector<8x8xi32>
    %cst_20 = arith.constant 0.000000e+00 : f32
    %64 = vector.shape_cast %47 : vector<8x1xf32> to vector<8x1xf32>
    %65 = vector.broadcast %64 : vector<8x1xf32> to vector<8x8xf32>
    %66 = vector.broadcast %cst_20 : f32 to vector<8x8xf32>
    %67 = arith.select %63, %65, %66 : vector<8x8xi1>, vector<8x8xf32>
    %68 = vector.shape_cast %28 : vector<8x1xf32> to vector<8x1xf32>
    %69 = vector.broadcast %68 : vector<8x1xf32> to vector<8x8xf32>
    %70 = arith.select %61, %69, %67 : vector<8x8xi1>, vector<8x8xf32>
    %71 = vector.shape_cast %56 : vector<8x1xf32> to vector<8x1xf32>
    %72 = vector.broadcast %71 : vector<8x1xf32> to vector<8x8xf32>
    %73 = arith.select %59, %72, %70 : vector<8x8xi1>, vector<8x8xf32>
    %c0_21 = arith.constant 0 : index
    %c0_22 = arith.constant 0 : index
    %74 = vector.load %arg6[%c0_21, %c0_22] : memref<8x8xf32, #tpu.memory_space<vmem>>, vector<8x8xf32>
    tpu.vector_store %arg6[%c0_21, %c0_22], %73 {strides = array<i32>} : memref<8x8xf32, #tpu.memory_space<vmem>>, vector<8x8xf32>,
    return
  }
  func.func @transform_0(%arg0: i32) -> (i32, i32) {
    %c0_i32 = arith.constant 0 : i32
    %c0_i32_0 = arith.constant 0 : i32
    return %arg0, %c0_i32 : i32, i32
  }
  func.func @transform_1(%arg0: i32) -> (i32, i32) {
    %c0_i32 = arith.constant 0 : i32
    %c0_i32_0 = arith.constant 0 : i32
    return %arg0, %c0_i32 : i32, i32
  }
  func.func @transform_2(%arg0: i32) -> (i32, i32) {
    %c0_i32 = arith.constant 0 : i32
    %c0_i32_0 = arith.constant 0 : i32
    %c0_i32_1 = arith.constant 0 : i32
    return %c0_i32, %c0_i32_0 : i32, i32
  }
  func.func @transform_3(%arg0: i32) -> (i32, i32) {
    %c0_i32 = arith.constant 0 : i32
    %c0_i32_0 = arith.constant 0 : i32
    %c0_i32_1 = arith.constant 0 : i32
    return %c0_i32, %c0_i32_0 : i32, i32
  }
  func.func @transform_4(%arg0: i32) -> (i32, i32) {
    %c0_i32 = arith.constant 0 : i32
    %c0_i32_0 = arith.constant 0 : i32
    %c0_i32_1 = arith.constant 0 : i32
    return %c0_i32, %c0_i32_0 : i32, i32
  }
  func.func @transform_5(%arg0: i32) -> (i32, i32) {
    %c0_i32 = arith.constant 0 : i32
    %c0_i32_0 = arith.constant 0 : i32
    return %arg0, %c0_i32 : i32, i32
  }
}

</mosaic_0001>

<bundles_post_ra>
// kernel: tpu_custom_call.1
= control target key start
LH: loop header
LB: loop body
LE: loop exit
PB: predicated region body
PF: predicated region fallthrough
CT: control target
= control target key end

     0   :  { %10 = vsyncpa [#allocation3], 0  ;;  %s552_s0 = inlined_call_operand.hbm [shape: f32[8,9], index: 0, kind: input, shape index: {}]   ;;  %s553_s1 = inlined_call_operand.hbm [shape: f32[8,18], index: 1, kind: input, shape index: {}]   ;;  %s554_s2 = inlined_call_operand.hbm [shape: f32[9,65], index: 2, kind: input, shape index: {}]   ;;  %s555_s3 = inlined_call_operand.hbm [shape: f32[65,85], index: 3, kind: input, shape index: {}]   ;;  %s556_s4 = inlined_call_operand.hbm [shape: f32[17,85], index: 4, kind: input, shape index: {}]   ;;  %s557_s5 = inlined_call_operand.hbm [shape: f32[8,8], index: 5, kind: output, shape index: {}]  }
   0x1   :  { %11 = vsyncpa [#allocation6], 0 }
   0x2   :  { %12 = vsyncpa [#allocation9], 0  ;;  %s30_s20 = sshll.u32 %s553_s1, 4  ;;  %s31_s20 = int_to_ptr.hbm [resolvable:$true] %s30_s20 }
   0x3   :  { %13 = vsyncpa [#allocation4], 0  ;;  %s483_s21 = smov [#allocation5]   ;;  %s53_s25 = sshll.u32 %s555_s3, 4  ;;  %s54_s25 = int_to_ptr.hbm [resolvable:$true] %s53_s25 }
   0x4   :  { %s32_s22 = sshll.u32 %s483_s21, 4  ;;  %s484_s26 = smov [#allocation8]   ;;  %s33_s22 = int_to_ptr.vmem [resolvable:$true] %s32_s22 }
   0x5   :  { %35 = dma.hbm_to_vmem [thread:$0]  %s31_s20, 128, %s33_s22, [#allocation6]  }
   0x6   :  { %s55_s27 = sshll.u32 %s484_s26, 4  ;;  %s19_s30 = sshll.u32 %s552_s0, 4  ;;  %s56_s27 = int_to_ptr.vmem [resolvable:$true] %s55_s27  ;;  %s20_s30 = int_to_ptr.hbm [resolvable:$true] %s19_s30 }
   0x7   :  { %s485_s1 = smov 128   ;;  %s486_s6 = smov 8  }
   0x8   :  { %61 = dma.hbm_to_vmem [thread:$0]  %s54_s25, 1152, %s56_s27, [#allocation9], %s485_s1, %s485_s1, %s486_s6  }
   0x9   :  { %s40_s9 = sshll.u32 %s554_s2, 4  ;;  %s487_s10 = smov [#allocation2]   ;;  %s41_s9 = int_to_ptr.hbm [resolvable:$true] %s40_s9 }
   0xa   :  { %s21_s11 = sshll.u32 %s487_s10, 4  ;;  %s488_s3 = smov [#allocation7]   ;;  %s22_s11 = int_to_ptr.vmem [resolvable:$true] %s21_s11 }
   0xb   :  { %24 = dma.hbm_to_vmem [thread:$0]  %s20_s30, 128, %s22_s11, [#allocation3]  }
   0xc   :  { %s42_s12 = sshll.u32 %s488_s3, 4  ;;  %s66_s0 = sshll.u32 %s556_s4, 4  ;;  %s43_s12 = int_to_ptr.vmem [resolvable:$true] %s42_s12  ;;  %s67_s0 = int_to_ptr.hbm [resolvable:$true] %s66_s0 }
   0xd   :  { %48 = dma.hbm_to_vmem [thread:$0]  %s41_s9, 256, %s43_s12, [#allocation6], %s485_s1, %s485_s1, %s486_s6  }
   0xe   :  { %s489_s15 = smov [#allocation10]  }
   0xf   :  { %s68_s16 = sshll.u32 %s489_s15, 4  ;;  %s69_s16 = int_to_ptr.vmem [resolvable:$true] %s68_s16 }
  0x10   :  { %74 = dma.hbm_to_vmem [thread:$0]  %s67_s0, 384, %s69_s16, [#allocation9], %s485_s1, %s485_s1, %s486_s6  }
  0x11   :  { %475 = dma.done.wait [#allocation3], 128  }
  0x12   :  { %476 = vsyncadd [#allocation3], 4294967168 }
  0x13   :  { %477 = dma.done.wait [#allocation6], 384  }
  0x14   :  { %478 = vsyncadd [#allocation6], 4294966912 }
  0x15   :  { %479 = dma.done.wait [#allocation9], 1536  }
  0x16   :  { %480 = vsyncadd [#allocation9], 4294965760  ;;  %vm102_vm0 = vcmask 1040384   ;;  %v97_v0 = vld [vmem:[#allocation7 + $0x8] sm:$0x1]  ;;  %v96_v1 = vld [vmem:[#allocation7] sm:$0xff]  ;;  %v260_v46 = vlaneseq }
  0x17   :  { %297 = vmatpush.msk.msra.mxu0 %vm102_vm0, %v97_v0  ;;  %v95_v2 = vld [vmem:[#allocation2] sm:$0xff]  ;;  %vm98_vm1 = vcmask 72704   ;;  %v134_v4 = vld [vmem:[#allocation8 + $0x38] sm:$0xff]  ;;  %v133_v6 = vld [vmem:[#allocation8 + $0x30] sm:$0xff]  ;;  %vm167_vm2 = vcmask 138240   ;;  %vm136_vm3 = vcmask 531456  }
  0x18   :  { %v135_v3 = vld [vmem:[#allocation8 + $0x40] sm:$0x1]  ;;  %v166_v5 = vld [vmem:[#allocation10 + $0x10] sm:$0x1]  ;;  %v165_v7 = vld [vmem:[#allocation10 + $0x8] sm:$0xff]  ;;  %s490_s2 = smov 64  }
  0x19   :  { %299 = vmatpush.msk.msra.mxu1 %vm102_vm0, %v135_v3  ;;  %121 = vmatpush.msra.mxu0 %v96_v1  ;;  %v164_v8 = vld [vmem:[#allocation10] sm:$0xff]  ;;  %v131_v11 = vld [vmem:[#allocation8 + $0x20] sm:$0xff]  ;;  %v130_v12 = vld [vmem:[#allocation8 + $0x18] sm:$0xff]  ;;  %s491_s4 = smov 96   ;;  %s492_s17 = smov 112   ;;  %v494_v25 = vmov 17  }
  0x1a   :  { %301 = vmatpush.msk.msra.mxu2 %vm102_vm0, %v166_v5  ;;  %298 = vmatmul.msk.f32.vlgmr.msra.gmra.mxu0 %vm98_vm1, %v95_v2  ;;  %v132_v9 = vld [vmem:[#allocation8 + $0x28] sm:$0xff]  ;;  %v129_v13 = vld [vmem:[#allocation8 + $0x10] sm:$0xff]  ;;  %v127_v15 = vld [vmem:[#allocation8] sm:$0xff]  ;;  %s493_s18 = smov 120   ;;  %s495_s19 = smov 124   ;;  %vm225_vm5 = vcmask 31744  }
  0x1b   :  { %151 = vmatpush.msra.mxu1 %v134_v4  ;;  %v163_v10 = vld [vmem:[#allocation5] sm:$0xff]  ;;  %323 = vset.pattern.permute.xlu1 %v494_v25  ;;  %s496_s20 = smov 60   ;;  %v261_v50 = vand.u32 127, %v260_v46  ;;  %s497_s21 = smov [#allocation11]   ;;  %vm276_vm14 = vcmask 64512  }
  0x1c   :  { %188 = vmatpush.msra.mxu2 %v165_v7  ;;  %v128_v14 = vld [vmem:[#allocation8 + $0x8] sm:$0xff]  ;;  %324 = vset.pattern.permute.xlu0 %v494_v25  ;;  %v304_v26 = vceil.f32 %v163_v10  ;;  %v305_v27 = vfloor.f32 %v163_v10  ;;  %vm303_vm4 = vcmp.lt.s32.totalorder %v163_v10, 0  ;;  %s283_s22 = sshll.u32 %s497_s21, 4  ;;  %s285_s25 = sshll.u32 %s557_s5, 4  ;;  %s284_s22 = int_to_ptr.vmem [resolvable:$true] %s283_s22  ;;  %s286_s25 = int_to_ptr.hbm [resolvable:$true] %s285_s25 }
  0x1d   :  { %152 = vmatpush.msra.mxu1 %v133_v6  ;;  %vm272_vm11 = vcmp.eq.s32.totalorder %v261_v50, 2  ;;  %vm271_vm12 = vcmp.eq.s32.totalorder %v261_v50, 1  ;;  %vm270_vm13 = vcmp.eq.s32.totalorder %v261_v50, 0 }
  0x1e   :  { %189 = vmatpush.msra.mxu2 %v164_v8  ;;  %v306_v30 = vsel %vm303_vm4, %v304_v26, %v305_v27 }
  0x1f   :  { %153 = vmatpush.msra.mxu1 %v132_v9  ;;  %302 = vmatmul.msk.f32.vlgmr.msra.gmra.mxu2 %vm167_vm2, %v163_v10  ;;  %v307_v31 = vcvt.f32.s32 %v306_v30 }
  0x21   :  { %154 = vmatpush.msra.mxu1 %v131_v11 }
  0x23   :  { %155 = vmatpush.msra.mxu1 %v130_v12 }
  0x25   :  { %156 = vmatpush.msra.mxu1 %v129_v13 }
  0x27   :  { %157 = vmatpush.msra.mxu1 %v128_v14 }
  0x29   :  { %158 = vmatpush.msra.mxu1 %v127_v15 }
  0x97   :  { %v123_v16 = vpop.f32.mrf.mxu0 }
  0x98   :  { %v126_v17 = vmax.f32 %v123_v16, 0.0 }
  0x9a   :  { %300 = vmatmul.msk.f32.vlgmr.msra.gmra.mxu1 %vm136_vm3, %v126_v17 }
  0xa2   :  { %v191_v18 = vpop.f32.mrf.mxu2 }
 0x117   :  { %v160_v19 = vpop.f32.mrf.mxu1 }
 0x118   :  { %v194_v20 = vmul.f32 %v191_v18, %v160_v19 }
 0x11a   :  { %215 = vrot.lane.b32.xlu2 %v194_v20, %s490_s2  ;;  %196 = vrot.lane.b32.xlu0 %v194_v20, %s491_s4 }
 0x174   :  { %v216_v34 = vpop.permute.xlu2 %215 }
 0x18c   :  { %v197_v21 = vpop.permute.xlu0 %196 }
 0x18d   :  { %v199_v22 = vadd.f32 %v197_v21, %v194_v20 }
 0x18f   :  { %201 = vrot.lane.b32.xlu0 %v199_v22, %s492_s17 }
 0x201   :  { %v202_v23 = vpop.permute.xlu0 %201 }
 0x202   :  { %v204_v24 = vadd.f32 %v202_v23, %v199_v22 }
 0x204   :  { %206 = vrot.lane.b32.xlu1 %v204_v24, %s493_s18 }
 0x276   :  { %v207_v28 = vpop.permute.xlu1 %206 }
 0x277   :  { %v209_v29 = vadd.f32 %v207_v28, %v204_v24 }
 0x279   :  { %211 = vrot.lane.b32.xlu1 %v209_v29, %s495_s19 }
 0x281   :  { %263 = vperm.xlu1 %323, %v307_v31  }
 0x289   :  { %219 = vrot.lane.b32.xlu1 %v194_v20, %s496_s20 }
 0x2eb   :  { %v212_v32 = vpop.permute.xlu1 %211 }
 0x2ec   :  { %v214_v33 = vadd.f32 %v212_v32, %v209_v29 }
 0x2ee   :  { %v218_v35 = vadd.f32 %v216_v34, %v214_v33 }
 0x2f0   :  { %v226_v36 = vsel %vm225_vm5, %v218_v35, -inf }
 0x2f1   :  { %227 = vmax.xlane.f32.xlu2 %v226_v36 }
 0x2f3   :  { %v264_v37 = vpop.permute.xlu1 %263 }
 0x2f4   :  { %vm265_vm6 = vcmp.eq.s32.totalorder %v261_v50, %v264_v37 }
 0x2fb   :  { %v220_v38 = vpop.permute.xlu1 %219 }
 0x2fc   :  { %v222_v39 = vsel %vm167_vm2, %v220_v38, 0.0 }
 0x2fd   :  { %223 = vadd.xlane.f32.xlu2 %v222_v39 }
 0x364   :  { %v228_v40 = vpop.xlane.xlu2 %227 }
 0x365   :  { %v229_v41 = vsub.f32 %v218_v35, %v228_v40 }
 0x367   :  { %v230_v42 = vmul.f32 1.442695, %v229_v41 }
 0x369   :  { %325 = vpow2.f32 %v230_v42 }
 0x36f   :  { %v326_v43 = vpop.eup %325 }
 0x370   :  { %v232_v44 = vsel %vm225_vm5, %v326_v43, 0.0  ;;  %v224_v3 = vpop.xlane.xlu2 %223 }
 0x371   :  { %233 = vadd.xlane.f32.xlu0 %v232_v44 }
 0x3e4   :  { %v234_v45 = vpop.xlane.xlu0 %233 }
 0x3e5   :  { %327 = vlog2.f32 %v234_v45  ;;  %v250_v54 = vand.u32 2147483648, %v234_v45  ;;  %v248_v57 = vand.u32 2147483647, %v234_v45  ;;  %vm244_vm8 = vweird.f32 %v234_v45 }
 0x3e6   :  { %329 = vrcp.f32 %v234_v45 }
 0x3e7   :  { %v251_v61 = vor.u32 1.1754944e-38, %v250_v54  ;;  %vm249_vm10 = vcmp.eq.f32.partialorder %v248_v57, 8.507059e+37 }
 0x3eb   :  { %v328_v47 = vpop.eup %327 }
 0x3ec   :  { %v330_v48 = vpop.eup %329  ;;  %v236_v49 = vmul.f32 0.6931472, %v328_v47 }
 0x3ed   :  { %v240_v51 = vmul.f32 %v330_v48, %v234_v45  ;;  %vm245_vm7 = vweird.f32 %v330_v48 }
 0x3ee   :  { %v237_v52 = vadd.f32 %v236_v49, %v228_v40  ;;  %vm246_vm9 = vmor %vm244_vm8, %vm245_vm7 }
 0x3ef   :  { %v241_v53 = vsub.f32 1.0, %v240_v51 }
 0x3f0   :  { %v238_v55 = vsub.f32 %v218_v35, %v237_v52 }
 0x3f1   :  { %v242_v56 = vmul.f32 %v330_v48, %v241_v53 }
 0x3f2   :  { %v266_v58 = vsel %vm265_vm6, %v238_v55, 0.0 }
 0x3f3   :  { %v267_v59 = vsel %vm225_vm5, %v266_v58, 0.0  ;;  %v243_v60 = vadd.f32 %v330_v48, %v242_v56 }
 0x3f4   :  { %268 = vadd.xlane.f32.xlu2 %v267_v59 }
 0x3f5   :  { %v247_v62 = vsel %vm246_vm9, %v330_v48, %v243_v60 }
 0x3f6   :  { %v252_v63 = vsel %vm249_vm10, %v251_v61, %v247_v62 }
 0x3f7   :  { %v253_v0 = vmul.f32 %v326_v43, %v252_v63 }
 0x3f9   :  { %v254_v1 = vmul.f32 %v253_v0, %v238_v55 }
 0x3fb   :  { %v255_v2 = vsel %vm225_vm5, %v254_v1, 0.0 }
 0x3fc   :  { %256 = vadd.xlane.f32.xlu1 %v255_v2 }
 0x467   :  { %v269_v7 = vpop.xlane.xlu2 %268 }
 0x46f   :  { %v257_v4 = vpop.xlane.xlu1 %256 }
 0x470   :  { %v258_v5 = vsub.f32 0.0, %v257_v4 }
 0x472   :  { %v273_v6 = vsel %vm272_vm11, %v258_v5, 0.0 }
 0x473   :  { %v274_v8 = vsel %vm271_vm12, %v224_v3, %v273_v6 }
 0x474   :  { %v275_v9 = vsel %vm270_vm13, %v269_v7, %v274_v8 }
 0x475   :  { %277 = vst.msk [vmem:[#allocation11] sm:$0xff] %vm276_vm14, %v275_v9 }
 0x476   :  { %288 = dma.vmem_to_hbm [thread:$0]  %s284_s22, 128, %s286_s25, [#allocation4]  }
 0x477   :  { %481 = dma.done.wait [#allocation4], 128  }
 0x478   :  { %482 = vsyncadd [#allocation4], 4294967168 }
 0x479   :  { %293 = vsyncpa [#allocation3], 1 }
 0x47a   :  { %294 = vsyncpa [#allocation6], 1 }
 0x47b   :  { %295 = vsyncpa [#allocation9], 1 }
 0x47c   :  { %296 = vsyncpa [#allocation4], 1 }

</bundles_post_ra>
